<compile_context>
chip_gen: v7x
topology: tpu7x:2x2x1
jax: 0.10.0
libtpu: 0.0.40
codegen_flags: <defaults>
</compile_context>

<pallas_src>
import functools

import jax
import jax.numpy as jnp
from jax import lax
from jax.experimental import pallas as pl
from jax.experimental.pallas import tpu as pltpu

_LANE = 128


def _round_up(v, m):
    return (v + m - 1) // m * m


def _round_down(v, m):
    return v // m * m


def _spatial_mean_kernel(x_ref, o_ref, acc_ref, *, inv_hw, hw, thw, mask_tail):
    """Accumulate lane-dense (1, tc) row sums of one (tc, thw) input tile."""
    k = pl.program_id(1)

    @pl.when(k == 0)
    def _init():
        acc_ref[...] = jnp.zeros_like(acc_ref)

    x = x_ref[...].astype(jnp.float32)                       # (tc, thw)
    if mask_tail:
        # Ragged last hw block: zero the lanes that fall past hw so the
        # garbage in the padded region never enters the reduction.
        lane = lax.broadcasted_iota(jnp.int32, x.shape, 1)
        x = jnp.where(lane < (hw - k * thw), x, 0.0)

    # Ones-vector contraction on the MXU: (1, thw) . (tc, thw) -> (1, tc).
    # Keeps the per-row sums lane-dense so the output store is a full-lane
    # vst instead of masked single-lane stores.
    ones = jnp.ones((1, x.shape[1]), jnp.float32)
    acc_ref[...] += lax.dot_general(
        ones, x, (((1,), (1,)), ((), ())),
        preferred_element_type=jnp.float32)

    @pl.when(k == pl.num_programs(1) - 1)
    def _finalize():
        o_ref[...] = (acc_ref[...] * inv_hw).astype(o_ref.dtype)


def spatial_mean(x, *, block_budget_bytes=1 << 20):
    """x: (N, C, H, W) -> (N, C, 1, 1), mean over H and W (keepdim=True)."""
    n, c, h, w = x.shape
    rows = n * c
    hw = h * w
    itemsize = jnp.dtype(x.dtype).itemsize
    total_bytes = rows * hw * itemsize

    try:
        vmem_cap = int(pltpu.get_tpu_info().vmem_capacity_bytes)
    except Exception:
        vmem_cap = 64 * 1024 * 1024  # conservative fallback (v7x per-core)

    hw_lanes = _round_up(hw, _LANE)
    row_bytes = hw_lanes * itemsize

    # ---- row tile (tc): multiple of 128 (lane-dense output) or == rows -----
    if rows <= _LANE:
        tc = rows
    else:
        tc = min(
            max(_LANE, _round_down(block_budget_bytes // row_bytes, _LANE)),
            _round_down(rows, _LANE))
        # Keep >= 2 row steps for >0.5 MiB inputs so both v7x TensorCores get
        # work (one extra ~0.35 us step is harmless on single-TC chips).
        if total_bytes > 512 * 1024 and pl.cdiv(rows, tc) < 2:
            tc = min(tc, _round_up(pl.cdiv(rows, 2), _LANE))
        # Re-balance the row steps so they are roughly equal.
        tc = min(tc, _round_up(pl.cdiv(rows, pl.cdiv(rows, tc)), _LANE))
    num_row_steps = pl.cdiv(rows, tc)

    # ---- hw tile (thw): full hw when it fits, else lane-aligned chunks -----
    if tc * row_bytes <= 2 * block_budget_bytes:
        thw = hw
        num_hw_steps = 1
    else:
        thw = max(_LANE,
                  _round_down(block_budget_bytes // (tc * itemsize), _LANE))
        num_hw_steps = pl.cdiv(hw, thw)
    mask_tail = (hw % thw) != 0

    x2d = x.reshape(rows, hw)        # free view: no pad, no transpose in HBM

    # Tight VMEM request: double-buffered in/out blocks + accumulator + slack.
    in_blk = tc * (_round_up(thw, _LANE) if num_hw_steps > 1 else hw_lanes) * itemsize
    out_blk = 8 * _round_up(tc, _LANE) * itemsize
    acc_blk = 8 * _round_up(tc, _LANE) * 4
    vmem_limit = int(min(2 * in_blk + 2 * out_blk + acc_blk + (4 << 20),
                         int(vmem_cap * 0.9)))

    cost = pl.CostEstimate(
        flops=rows * hw + rows,
        transcendentals=0,
        bytes_accessed=total_bytes + rows * itemsize)

    out2d = pl.pallas_call(
        functools.partial(_spatial_mean_kernel, inv_hw=1.0 / float(hw),
                          hw=hw, thw=thw, mask_tail=mask_tail),
        out_shape=jax.ShapeDtypeStruct((1, rows), x.dtype),
        grid=(num_row_steps, num_hw_steps),
        in_specs=[pl.BlockSpec((tc, thw), lambda i, k: (i, k))],
        out_specs=pl.BlockSpec((1, tc), lambda i, k: (0, i)),
        scratch_shapes=[pltpu.VMEM((1, tc), jnp.float32)],
        compiler_params=pltpu.CompilerParams(
            dimension_semantics=("parallel", "arbitrary"),
            vmem_limit_bytes=vmem_limit,
        ),
        cost_estimate=cost,
    )(x2d)

    return out2d.reshape(n, c, 1, 1)


if __name__ == "__main__":
    # Small shape consistent with the module (NCHW, spatial mean, keepdim).
    x_small = jax.random.normal(jax.random.PRNGKey(0), (2, 4, 16, 16),
                                dtype=jnp.float32)
    y_small = spatial_mean(x_small)
    jax.block_until_ready(y_small)
    ref_small = jnp.mean(x_small, axis=(2, 3), keepdims=True)
    assert y_small.shape == (2, 4, 1, 1)
    assert jnp.allclose(y_small, ref_small, atol=1e-5, rtol=1e-5)

    # Original module shape: (1, 3072, 7, 7) -> (1, 3072, 1, 1).
    x551 = jax.random.normal(jax.random.PRNGKey(1), (1, 3072, 7, 7),
                             dtype=jnp.float32)
    x552 = spatial_mean(x551)
    jax.block_until_ready(x552)
    ref = jnp.mean(x551, axis=(2, 3), keepdims=True)
    assert x552.shape == (1, 3072, 1, 1)
    assert jnp.allclose(x552, ref, atol=1e-5, rtol=1e-5)

    # Non-aligned / ragged-tiling shape to exercise partial blocks + hw tiling.
    x_odd = jax.random.normal(jax.random.PRNGKey(2), (3, 70, 11, 13),
                              dtype=jnp.float32)
    y_odd = spatial_mean(x_odd, block_budget_bytes=64 * 1024)
    jax.block_until_ready(y_odd)
    ref_odd = jnp.mean(x_odd, axis=(2, 3), keepdims=True)
    assert jnp.allclose(y_odd, ref_odd, atol=1e-5, rtol=1e-5)

    print("KERNEL_OK")
</pallas_src>

<mosaic_0001>
module attributes {stable_mosaic.version = 11 : i64} {
  func.func @_spatial_mean_kernel(%arg0: i32, %arg1: i32, %arg2: memref<8x256xf32, #tpu.memory_space<vmem>>, %arg3: memref<1x8xf32, #tpu.memory_space<vmem>>, %arg4: memref<1x8xf32, #tpu.memory_space<vmem>>) attributes {dimension_semantics = [#tpu.dimension_semantics<parallel>, #tpu.dimension_semantics<arbitrary>], iteration_bounds = array<i64: 1, 1>, scalar_prefetch = 0 : i64, scratch_operands = 1 : i64, tpu.core_type = #tpu.core_type<tc>, window_params = [{transform_indices = @transform_0, window_bounds = array<i64: 8, 256>}, {transform_indices = @transform_1, window_bounds = array<i64: 1, 8>}]} {
    %c0_i32 = arith.constant 0 : i32
    %0 = arith.cmpi eq, %arg1, %c0_i32 : i32
    %1 = arith.extui %0 : i1 to i32
    %c0_i32_0 = arith.constant 0 : i32
    %2 = arith.cmpi ne, %1, %c0_i32_0 : i32
    scf.if %2 {
      %cst_9 = arith.constant 0.000000e+00 : f32
      %12 = vector.broadcast %cst_9 : f32 to vector<1x8xf32>
      %c0_10 = arith.constant 0 : index
      %c0_11 = arith.constant 0 : index
      %13 = vector.load %arg4[%c0_10, %c0_11] : memref<1x8xf32, #tpu.memory_space<vmem>>, vector<1x8xf32>
      tpu.vector_store %arg4[%c0_10, %c0_11], %12 {strides = array<i32>} : memref<1x8xf32, #tpu.memory_space<vmem>>, vector<1x8xf32>,
    } else {
    }
    %c0 = arith.constant 0 : index
    %c0_1 = arith.constant 0 : index
    %3 = vector.load %arg2[%c0, %c0_1] : memref<8x256xf32, #tpu.memory_space<vmem>>, vector<8x256xf32>
    %cst = arith.constant 1.000000e+00 : f32
    %4 = vector.broadcast %cst : f32 to vector<1x256xf32>
    %c0_2 = arith.constant 0 : index
    %c0_3 = arith.constant 0 : index
    %5 = vector.load %arg4[%c0_2, %c0_3] : memref<1x8xf32, #tpu.memory_space<vmem>>, vector<1x8xf32>
    %cst_4 = arith.constant dense<0.000000e+00> : vector<1x8xf32>
    %6 = tpu.matmul %4, %3, %cst_4 {dimension_numbers = #tpu.dot_dimension_numbers<[1], [1], [0], [0], [0, 0, 1, 0], [], []>} : vector<1x256xf32>, vector<8x256xf32>, vector<1x8xf32> -> vector<1x8xf32>
    %7 = arith.addf %5, %6 : vector<1x8xf32>
    %c0_5 = arith.constant 0 : index
    %c0_6 = arith.constant 0 : index
    %8 = vector.load %arg4[%c0_5, %c0_6] : memref<1x8xf32, #tpu.memory_space<vmem>>, vector<1x8xf32>
    tpu.vector_store %arg4[%c0_5, %c0_6], %7 {strides = array<i32>} : memref<1x8xf32, #tpu.memory_space<vmem>>, vector<1x8xf32>,
    %c0_i32_7 = arith.constant 0 : i32
    %9 = arith.cmpi eq, %arg1, %c0_i32_7 : i32
    %10 = arith.extui %9 : i1 to i32
    %c0_i32_8 = arith.constant 0 : i32
    %11 = arith.cmpi ne, %10, %c0_i32_8 : i32
    scf.if %11 {
      %c0_9 = arith.constant 0 : index
      %c0_10 = arith.constant 0 : index
      %12 = vector.load %arg4[%c0_9, %c0_10] : memref<1x8xf32, #tpu.memory_space<vmem>>, vector<1x8xf32>
      %cst_11 = arith.constant 3.906250e-03 : f32
      %13 = vector.broadcast %cst_11 : f32 to vector<1x8xf32>
      %14 = arith.mulf %12, %13 : vector<1x8xf32>
      %c0_12 = arith.constant 0 : index
      %c0_13 = arith.constant 0 : index
      %15 = vector.load %arg3[%c0_12, %c0_13] : memref<1x8xf32, #tpu.memory_space<vmem>>, vector<1x8xf32>
      tpu.vector_store %arg3[%c0_12, %c0_13], %14 {strides = array<i32>} : memref<1x8xf32, #tpu.memory_space<vmem>>, vector<1x8xf32>,
    } else {
    }
    return
  }
  func.func @transform_0(%arg0: i32, %arg1: i32) -> (i32, i32) {
    %c0_i32 = arith.constant 0 : i32
    return %arg0, %arg1 : i32, i32
  }
  func.func @transform_1(%arg0: i32, %arg1: i32) -> (i32, i32) {
    %c0_i32 = arith.constant 0 : i32
    %c0_i32_0 = arith.constant 0 : i32
    return %c0_i32, %arg0 : i32, i32
  }
}

</mosaic_0001>

<bundles_post_ra>
// kernel: tpu_custom_call.1
= control target key start
LH: loop header
LB: loop body
LE: loop exit
PB: predicated region body
PF: predicated region fallthrough
CT: control target
= control target key end

     0   :  { %6 = vsyncpa [#allocation4], 0  ;;  %s217_s0 = inlined_call_operand.hbm [shape: f32[8,256], index: 0, kind: input, shape index: {}]   ;;  %s218_s1 = inlined_call_operand.hbm [shape: f32[1,8], index: 1, kind: output, shape index: {}]  }
   0x1   :  { %7 = vsyncpa [#allocation5], 0  ;;  %s176_s6 = smov [#allocation3]   ;;  %s128_s10 = scalar_lea.hbm %s217_s0, 256 }
   0x2   :  { %s14_s7 = sshll.u32 %s176_s6, 4  ;;  %p129_p0 = scmp.ne.s32.totalorder %s217_s0, %s128_s10  ;;  %s15_s7 = int_to_ptr.vmem [resolvable:$true] %s14_s7 }
   0x3   :  { %p132_p1 = scmp.lt.u32.totalorder %s128_s10, %s217_s0 }
   0x5   :  { %p134_p2 = pnand %p132_p1, %p129_p0 }
   0x7   :  { %137 = shalt.err (!%p134_p2)
}
   0x8   :  { %s138_s15 = scalar_lea.vmem %s15_s7, 256  ;;  %p143_p4 = scmp.lt.s32.totalorder %s15_s7, %s15_s7 }
   0x9   :  { %p139_p3 = scmp.ne.s32.totalorder %s15_s7, %s138_s15  ;;  %p144_p5 = scmp.lt.s32.totalorder %s138_s15, %s138_s15 }
   0xb   :  { %p145_p6 = por %p144_p5, %p143_p4 }
   0xd   :  { %p146_p7 = pnand %p145_p6, %p139_p3 }
   0xf   :  { %149 = shalt.err (!%p146_p7)
}
  0x10   :  { %17 = dma.hbm_to_vmem [thread:$0]  %s217_s0, 256, %s15_s7, [#allocation4]  }
  0x11   :  { %172 = dma.done.wait [#allocation4], 256  }
  0x12   :  { %173 = vsyncadd [#allocation4], 4294967040  ;;  %vm25_vm0 = vcmask 57344   ;;  %v177_v0 = vmov 1.0   ;;  %v178_v1 = vmov 0.0   ;;  %v28_v2 = vld [vmem:[#allocation3 + $0x8] sm:$0xff] }
  0x13   :  { %94 = vmatprep.mubr.f32.mxu0 %v177_v0  ;;  %26 = vst.msk [vmem:[#allocation2] sm:$0x1] %vm25_vm0, %v178_v1  ;;  %v27_v3 = vld [vmem:[#allocation3] sm:$0xff]  ;;  %30 = vmatprep.subr.mxu0 %v28_v2  ;;  %s179_s0 = smov [#allocation6]  }
  0x14   :  { %31 = vmatpush1.xpose.msra.mxu0 %v27_v3  ;;  %s115_s18 = sshll.u32 %s179_s0, 4  ;;  %s116_s18 = int_to_ptr.vmem [resolvable:$true] %s115_s18 }
  0x15   :  { %s150_s19 = scalar_lea.vmem %s116_s18, 16  ;;  %s154_s20 = scalar_lea.vmem %s116_s18, 32 }
  0x16   :  { %p151_p8 = scmp.ne.s32.totalorder %s116_s18, %s150_s19  ;;  %p155_p9 = scmp.lt.s32.totalorder %s116_s18, %s116_s18 }
  0x17   :  { %95 = vmatmul.mubr.f32.vlgmr.msra.gmra.mrb[0].mxu0 %v177_v0  ;;  %p156_p10 = scmp.lt.s32.totalorder %s154_s20, %s150_s19 }
  0x19   :  { %p157_p11 = por %p156_p10, %p155_p9 }
  0x1a   :  { %v29_v4 = vld [vmem:[#allocation2] sm:$0x1] }
  0x1b   :  { %p158_p12 = pnand %p157_p11, %p151_p8 }
  0xea   :  { %v96_v5 = vpop.f32.mrb[0].mxu0 }
  0xeb   :  { %v100_v6 = vadd.f32 %v96_v5, %v29_v4  ;;  %v98_v7 = vpop.f32.mrb[1].mxu0 }
  0xed   :  { %102 = vst.msk [vmem:[#allocation2] sm:$0x1] %vm25_vm0, %v100_v6 }
  0xf4   :  { %v106_v8 = vld [vmem:[#allocation2] sm:$0x1] }
  0xf5   :  { %v107_v9 = vmul.f32 0.00390625, %v106_v8 }
  0xf7   :  { %108 = vst.msk [vmem:[#allocation6] sm:$0x1] %vm25_vm0, %v107_v9 }
  0xf8   :  { %161 = shalt.err (!%p158_p12)
}
  0xf9   :  { %s162_s23 = scalar_lea.hbm %s218_s1, 16 }
  0xfa   :  { %p163_p13 = scmp.ne.s32.totalorder %s218_s1, %s162_s23  ;;  %p166_p0 = scmp.lt.u32.totalorder %s162_s23, %s218_s1 }
  0xfc   :  { %p168_p1 = pnand %p166_p0, %p163_p13 }
  0xfe   :  { %171 = shalt.err (!%p168_p1)
}
  0xff   :  { %118 = dma.vmem_to_hbm [thread:$0]  %s116_s18, 16, %s218_s1, [#allocation5]  }
 0x100   :  { %174 = dma.done.wait [#allocation5], 16  }
 0x101   :  { %175 = vsyncadd [#allocation5], 4294967280 }
 0x102   :  { %122 = vsyncpa [#allocation4], 1 }
 0x103   :  { %123 = vsyncpa [#allocation5], 1 }

</bundles_post_ra>
